<compile_context>
chip_gen: v6e
topology: v6e:2x2x1
jax: 0.10.0
libtpu: 0.0.40
codegen_flags: <defaults>
</compile_context>

<pallas_src>
import jax
import jax.numpy as jnp
from jax.experimental import pallas as pl
from jax.experimental.pallas import tpu as pltpu


# ----------------------------------------------------------------------------- helpers


def _split3_bf16(x):
    """Split an f32 array into three bf16 parts whose f32 sum reconstructs x exactly."""
    hi = x.astype(jnp.bfloat16)
    r1 = x - hi.astype(jnp.float32)
    mid = r1.astype(jnp.bfloat16)
    r2 = r1 - mid.astype(jnp.float32)
    lo = r2.astype(jnp.bfloat16)
    return hi, mid, lo


def _exact_select_cols(x, sel):
    """x (m, n) f32, sel (n, p) one-hot bf16 -> exact column gather (m, p) f32 via MXU."""
    hi, mid, lo = _split3_bf16(x)
    d = lambda part: jnp.dot(part, sel, preferred_element_type=jnp.float32)
    return (d(hi) + d(mid)) + d(lo)


def _exact_select_rows(sel, x):
    """sel (q, m) one-hot bf16, x (m, n) f32 -> exact row gather (q, n) f32 via MXU."""
    hi, mid, lo = _split3_bf16(x)
    d = lambda part: jnp.dot(sel, part, preferred_element_type=jnp.float32)
    return (d(hi) + d(mid)) + d(lo)


def _pick_c_block(nc, plane_bytes, cap_bytes=2 * 1024 * 1024, max_unroll=32):
    """Largest divisor of nc that (a) keeps the input tile under cap_bytes, (b) keeps the
    per-channel unrolled loop small, and (c) leaves >=2 grid steps for megacore sharding."""
    cap = max(1, cap_bytes // max(1, plane_bytes))
    limit = min(cap, max_unroll, nc if nc < 2 else max(1, nc // 2))
    best = 1
    for d in range(1, nc + 1):
        if nc % d == 0 and d <= limit:
            best = d
    return best


# ----------------------------------------------------------------------------- kernel


def _make_kernel(kh, kw, hneed, wneed, c_block):
    def kernel(wa_ref, wm_ref, x_ref, selw_ref, selht_ref, out_ref):
        # x_ref: (c_block, H, W) tile of input planes (one plane per (n, c)).
        x = x_ref[...].astype(jnp.float32)

        # ---- W-direction window combine: unrolled VPU add/max over lane-shifted slices.
        wsum = x[:, :, 0:wneed]
        wmax = wsum
        for j in range(1, kw):
            xj = x[:, :, j:j + wneed]
            wsum = wsum + xj
            wmax = jnp.maximum(wmax, xj)

        # ---- H-direction window combine: unrolled VPU add/max over sublane-shifted slices.
        hsum = wsum[:, 0:hneed, :]
        hmax = wmax[:, 0:hneed, :]
        for i in range(1, kh):
            hsum = hsum + wsum[:, i:i + hneed, :]
            hmax = jnp.maximum(hmax, wmax[:, i:i + hneed, :])

        selw = selw_ref[...]      # (wneed, Wo)  one-hot bf16
        selht = selht_ref[...]    # (Ho, hneed)  one-hot bf16
        base = pl.program_id(0) * c_block

        # Per-plane weighting (scalars from SMEM) + exact strided selection via MXU.
        for lc in range(c_block):
            g = base + lc
            comb = wa_ref[g] * hsum[lc] + wm_ref[g] * hmax[lc]     # (hneed, wneed) f32
            t = _exact_select_cols(comb, selw)                     # (hneed, Wo)
            o = _exact_select_rows(selht, t)                       # (Ho, Wo)
            out_ref[lc] = o.astype(out_ref.dtype)

    return kernel


# ----------------------------------------------------------------------------- wrapper


def comb_pool2d(x, weight_avg, weight_max, kernel_size, stride=None, padding=0):
    """x: (N, C, H, W). weight_avg / weight_max: (1, C, 1, 1) raw params (coeff = weight**2)."""
    if isinstance(kernel_size, int):
        kernel_size = (kernel_size, kernel_size)
    if stride is None:
        stride = kernel_size
    if isinstance(stride, int):
        stride = (stride, stride)
    if isinstance(padding, (list, tuple)):
        # F.pad(input, padding): pairs apply to dims from the last backwards.
        pad_cfg = [(0, 0)] * x.ndim
        for k in range(len(padding) // 2):
            dim = x.ndim - 1 - k
            pad_cfg[dim] = (int(padding[2 * k]), int(padding[2 * k + 1]))
        x = jnp.pad(x, pad_cfg)
    # integer padding is ignored, exactly as in the PyTorch forward

    kh, kw = kernel_size
    sh, sw = stride
    N, C, H, W = x.shape
    Ho = (H - kh) // sh + 1
    Wo = (W - kw) // sw + 1
    hneed = (Ho - 1) * sh + 1
    wneed = (Wo - 1) * sw + 1
    K = kh * kw
    NC = N * C

    x_flat = x.reshape(NC, H, W)                         # free reshape, keeps input dtype

    # Channelwise coefficients = weight**2; fold 1/K into the 'avg' coefficient so the
    # kernel only needs a windowed *sum*.  One scalar per (n, c) plane, 1-D in SMEM.
    wa = (weight_avg.reshape(C).astype(jnp.float32) ** 2) / float(K)
    wm = weight_max.reshape(C).astype(jnp.float32) ** 2
    wa_full = jnp.tile(wa, N)                            # (NC,)
    wm_full = jnp.tile(wm, N)                            # (NC,)

    # One-hot selection matrices for the strided downsample (bf16 -> exact MXU gather).
    sel_w = (jnp.arange(wneed)[:, None] == jnp.arange(Wo)[None, :] * sw).astype(jnp.bfloat16)
    sel_ht = (jnp.arange(Ho)[:, None] * sh == jnp.arange(hneed)[None, :]).astype(jnp.bfloat16)

    c_block = _pick_c_block(NC, H * W * x.dtype.itemsize)
    grid = (NC // c_block,)

    kernel = _make_kernel(kh, kw, hneed, wneed, c_block)
    out = pl.pallas_call(
        kernel,
        out_shape=jax.ShapeDtypeStruct((NC, Ho, Wo), x.dtype),
        grid=grid,
        in_specs=[
            pl.BlockSpec(memory_space=pltpu.MemorySpace.SMEM),       # wa_full (NC,)
            pl.BlockSpec(memory_space=pltpu.MemorySpace.SMEM),       # wm_full (NC,)
            pl.BlockSpec((c_block, H, W), lambda i: (i, 0, 0)),      # input planes
            pl.BlockSpec((wneed, Wo), lambda i: (0, 0)),             # sel_w
            pl.BlockSpec((Ho, hneed), lambda i: (0, 0)),             # sel_ht
        ],
        out_specs=pl.BlockSpec((c_block, Ho, Wo), lambda i: (i, 0, 0)),
        compiler_params=pltpu.CompilerParams(
            dimension_semantics=("parallel",),
            vmem_limit_bytes=48 * 1024 * 1024,
        ),
    )(wa_full, wm_full, x_flat, sel_w, sel_ht)

    return out.reshape(N, C, Ho, Wo)


# ----------------------------------------------------------------------------- reference


def _reference(x, weight_avg, weight_max, kernel_size, stride):
    kh, kw = kernel_size
    sh, sw = stride
    N, C, H, W = x.shape
    Ho = (H - kh) // sh + 1
    Wo = (W - kw) // sw + 1
    idx_h = (jnp.arange(Ho) * sh)[:, None] + jnp.arange(kh)[None, :]   # (Ho, kh)
    idx_w = (jnp.arange(Wo) * sw)[:, None] + jnp.arange(kw)[None, :]   # (Wo, kw)
    win = x[:, :, idx_h[:, :, None, None], idx_w[None, None, :, :]]    # (N,C,Ho,kh,Wo,kw)
    win = win.transpose(0, 1, 2, 4, 3, 5).reshape(N, C, Ho, Wo, kh * kw)
    ca = weight_avg.reshape(1, C, 1, 1).astype(jnp.float32) ** 2
    cm = weight_max.reshape(1, C, 1, 1).astype(jnp.float32) ** 2
    return ca * jnp.mean(win, axis=-1) + cm * jnp.max(win, axis=-1)


if __name__ == "__main__":
    key = jax.random.PRNGKey(0)
    k_x, k_wa, k_wm = jax.random.split(key, 3)

    N, C, H, W = 2, 4, 16, 16
    kernel_size = (2, 2)
    stride = (2, 2)

    x = jax.random.normal(k_x, (N, C, H, W), dtype=jnp.float32)
    # torch.rand(1, C, 1, 1) equivalents (uniform [0, 1)), deterministic
    weight_avg = jax.random.uniform(k_wa, (1, C, 1, 1), dtype=jnp.float32)
    weight_max = jax.random.uniform(k_wm, (1, C, 1, 1), dtype=jnp.float32)

    out = comb_pool2d(x, weight_avg, weight_max, kernel_size, stride)
    out = jax.block_until_ready(out)

    ref = _reference(x, weight_avg, weight_max, kernel_size, stride)
    assert out.shape == (N, C, H // 2, W // 2), out.shape
    assert jnp.allclose(out, ref, atol=1e-5, rtol=1e-5), "mismatch vs reference"

    print("KERNEL_OK")
</pallas_src>

<mosaic_0001>
module attributes {stable_mosaic.version = 11 : i64} {
  func.func @kernel(%arg0: i32, %arg1: memref<8xf32, #tpu.memory_space<smem>>, %arg2: memref<8xf32, #tpu.memory_space<smem>>, %arg3: memref<4x16x16xf32, #tpu.memory_space<vmem>>, %arg4: memref<15x8xbf16, #tpu.memory_space<vmem>>, %arg5: memref<8x15xbf16, #tpu.memory_space<vmem>>, %arg6: memref<4x8x8xf32, #tpu.memory_space<vmem>>) attributes {dimension_semantics = [#tpu.dimension_semantics<parallel>], iteration_bounds = array<i64: 2>, scalar_prefetch = 0 : i64, scratch_operands = 0 : i64, tpu.core_type = #tpu.core_type<tc>, window_params = [{transform_indices = @transform_0, window_bounds = array<i64: 8>}, {transform_indices = @transform_1, window_bounds = array<i64: 8>}, {transform_indices = @transform_2, window_bounds = array<i64: 4, 16, 16>}, {pipeline_mode = #tpu.pipeline_mode<synchronous>, transform_indices = @transform_3, window_bounds = array<i64: 15, 8>}, {pipeline_mode = #tpu.pipeline_mode<synchronous>, transform_indices = @transform_4, window_bounds = array<i64: 8, 15>}, {transform_indices = @transform_5, window_bounds = array<i64: 4, 8, 8>}]} {
    %c0 = arith.constant 0 : index
    %c0_0 = arith.constant 0 : index
    %c0_1 = arith.constant 0 : index
    %0 = vector.load %arg3[%c0, %c0_0, %c0_1] : memref<4x16x16xf32, #tpu.memory_space<vmem>>, vector<4x16x16xf32>
    %1 = vector.extract_strided_slice %0 {offsets = [0, 0, 0], sizes = [4, 16, 15], strides = [1, 1, 1]} : vector<4x16x16xf32> to vector<4x16x15xf32>
    %2 = vector.extract_strided_slice %0 {offsets = [0, 0, 1], sizes = [4, 16, 15], strides = [1, 1, 1]} : vector<4x16x16xf32> to vector<4x16x15xf32>
    %3 = arith.addf %1, %2 : vector<4x16x15xf32>
    %4 = arith.maximumf %1, %2 : vector<4x16x15xf32>
    %5 = vector.extract_strided_slice %3 {offsets = [0, 0, 0], sizes = [4, 15, 15], strides = [1, 1, 1]} : vector<4x16x15xf32> to vector<4x15x15xf32>
    %6 = vector.extract_strided_slice %4 {offsets = [0, 0, 0], sizes = [4, 15, 15], strides = [1, 1, 1]} : vector<4x16x15xf32> to vector<4x15x15xf32>
    %7 = vector.extract_strided_slice %3 {offsets = [0, 1, 0], sizes = [4, 15, 15], strides = [1, 1, 1]} : vector<4x16x15xf32> to vector<4x15x15xf32>
    %8 = arith.addf %5, %7 : vector<4x15x15xf32>
    %9 = vector.extract_strided_slice %4 {offsets = [0, 1, 0], sizes = [4, 15, 15], strides = [1, 1, 1]} : vector<4x16x15xf32> to vector<4x15x15xf32>
    %10 = arith.maximumf %6, %9 : vector<4x15x15xf32>
    %c0_2 = arith.constant 0 : index
    %c0_3 = arith.constant 0 : index
    %11 = vector.load %arg4[%c0_2, %c0_3] : memref<15x8xbf16, #tpu.memory_space<vmem>>, vector<15x8xbf16>
    %c0_4 = arith.constant 0 : index
    %c0_5 = arith.constant 0 : index
    %12 = vector.load %arg5[%c0_4, %c0_5] : memref<8x15xbf16, #tpu.memory_space<vmem>>, vector<8x15xbf16>
    %c4_i32 = arith.constant 4 : i32
    %13 = arith.muli %arg0, %c4_i32 : i32
    %c0_i32 = arith.constant 0 : i32
    %14 = arith.addi %13, %c0_i32 : i32
    %15 = arith.index_cast %14 : i32 to index
    %16 = memref.load %arg1[%15] : memref<8xf32, #tpu.memory_space<smem>>
    %17 = vector.extract_strided_slice %8 {offsets = [0, 0, 0], sizes = [1, 15, 15], strides = [1, 1, 1]} : vector<4x15x15xf32> to vector<1x15x15xf32>
    %18 = vector.shape_cast %17 : vector<1x15x15xf32> to vector<15x15xf32>
    %19 = vector.broadcast %16 : f32 to vector<15x15xf32>
    %20 = arith.mulf %19, %18 : vector<15x15xf32>
    %21 = arith.index_cast %14 : i32 to index
    %22 = memref.load %arg2[%21] : memref<8xf32, #tpu.memory_space<smem>>
    %23 = vector.extract_strided_slice %10 {offsets = [0, 0, 0], sizes = [1, 15, 15], strides = [1, 1, 1]} : vector<4x15x15xf32> to vector<1x15x15xf32>
    %24 = vector.shape_cast %23 : vector<1x15x15xf32> to vector<15x15xf32>
    %25 = vector.broadcast %22 : f32 to vector<15x15xf32>
    %26 = arith.mulf %25, %24 : vector<15x15xf32>
    %27 = arith.addf %20, %26 : vector<15x15xf32>
    %28 = arith.truncf %27 : vector<15x15xf32> to vector<15x15xbf16>
    %29 = arith.extf %28 : vector<15x15xbf16> to vector<15x15xf32>
    %30 = arith.subf %27, %29 : vector<15x15xf32>
    %31 = arith.truncf %30 : vector<15x15xf32> to vector<15x15xbf16>
    %32 = arith.extf %31 : vector<15x15xbf16> to vector<15x15xf32>
    %33 = arith.subf %30, %32 : vector<15x15xf32>
    %34 = arith.truncf %33 : vector<15x15xf32> to vector<15x15xbf16>
    %cst = arith.constant dense<0.000000e+00> : vector<15x8xf32>
    %35 = tpu.matmul %28, %11, %cst {dimension_numbers = #tpu.dot_dimension_numbers<[1], [0], [0], [1], [0, 0, 1, 1], [], []>} : vector<15x15xbf16>, vector<15x8xbf16>, vector<15x8xf32> -> vector<15x8xf32>
    %cst_6 = arith.constant dense<0.000000e+00> : vector<15x8xf32>
    %36 = tpu.matmul %31, %11, %cst_6 {dimension_numbers = #tpu.dot_dimension_numbers<[1], [0], [0], [1], [0, 0, 1, 1], [], []>} : vector<15x15xbf16>, vector<15x8xbf16>, vector<15x8xf32> -> vector<15x8xf32>
    %37 = arith.addf %35, %36 : vector<15x8xf32>
    %cst_7 = arith.constant dense<0.000000e+00> : vector<15x8xf32>
    %38 = tpu.matmul %34, %11, %cst_7 {dimension_numbers = #tpu.dot_dimension_numbers<[1], [0], [0], [1], [0, 0, 1, 1], [], []>} : vector<15x15xbf16>, vector<15x8xbf16>, vector<15x8xf32> -> vector<15x8xf32>
    %39 = arith.addf %37, %38 : vector<15x8xf32>
    %40 = arith.truncf %39 : vector<15x8xf32> to vector<15x8xbf16>
    %41 = arith.extf %40 : vector<15x8xbf16> to vector<15x8xf32>
    %42 = arith.subf %39, %41 : vector<15x8xf32>
    %43 = arith.truncf %42 : vector<15x8xf32> to vector<15x8xbf16>
    %44 = arith.extf %43 : vector<15x8xbf16> to vector<15x8xf32>
    %45 = arith.subf %42, %44 : vector<15x8xf32>
    %46 = arith.truncf %45 : vector<15x8xf32> to vector<15x8xbf16>
    %cst_8 = arith.constant dense<0.000000e+00> : vector<8x8xf32>
    %47 = tpu.matmul %12, %40, %cst_8 {dimension_numbers = #tpu.dot_dimension_numbers<[1], [0], [0], [1], [0, 0, 1, 1], [], []>} : vector<8x15xbf16>, vector<15x8xbf16>, vector<8x8xf32> -> vector<8x8xf32>
    %cst_9 = arith.constant dense<0.000000e+00> : vector<8x8xf32>
    %48 = tpu.matmul %12, %43, %cst_9 {dimension_numbers = #tpu.dot_dimension_numbers<[1], [0], [0], [1], [0, 0, 1, 1], [], []>} : vector<8x15xbf16>, vector<15x8xbf16>, vector<8x8xf32> -> vector<8x8xf32>
    %49 = arith.addf %47, %48 : vector<8x8xf32>
    %cst_10 = arith.constant dense<0.000000e+00> : vector<8x8xf32>
    %50 = tpu.matmul %12, %46, %cst_10 {dimension_numbers = #tpu.dot_dimension_numbers<[1], [0], [0], [1], [0, 0, 1, 1], [], []>} : vector<8x15xbf16>, vector<15x8xbf16>, vector<8x8xf32> -> vector<8x8xf32>
    %51 = arith.addf %49, %50 : vector<8x8xf32>
    %c0_11 = arith.constant 0 : index
    %c0_12 = arith.constant 0 : index
    %c0_13 = arith.constant 0 : index
    %52 = vector.load %arg6[%c0_11, %c0_12, %c0_13] : memref<4x8x8xf32, #tpu.memory_space<vmem>>, vector<1x8x8xf32>
    %53 = vector.shape_cast %52 : vector<1x8x8xf32> to vector<8x8xf32>
    %54 = vector.shape_cast %51 : vector<8x8xf32> to vector<1x8x8xf32>
    tpu.vector_store %arg6[%c0_11, %c0_12, %c0_13], %54 {strides = array<i32>} : memref<4x8x8xf32, #tpu.memory_space<vmem>>, vector<1x8x8xf32>,
    %c1_i32 = arith.constant 1 : i32
    %55 = arith.addi %13, %c1_i32 : i32
    %56 = arith.index_cast %55 : i32 to index
    %57 = memref.load %arg1[%56] : memref<8xf32, #tpu.memory_space<smem>>
    %58 = vector.extract_strided_slice %8 {offsets = [1, 0, 0], sizes = [1, 15, 15], strides = [1, 1, 1]} : vector<4x15x15xf32> to vector<1x15x15xf32>
    %59 = vector.shape_cast %58 : vector<1x15x15xf32> to vector<15x15xf32>
    %60 = vector.broadcast %57 : f32 to vector<15x15xf32>
    %61 = arith.mulf %60, %59 : vector<15x15xf32>
    %62 = arith.index_cast %55 : i32 to index
    %63 = memref.load %arg2[%62] : memref<8xf32, #tpu.memory_space<smem>>
    %64 = vector.extract_strided_slice %10 {offsets = [1, 0, 0], sizes = [1, 15, 15], strides = [1, 1, 1]} : vector<4x15x15xf32> to vector<1x15x15xf32>
    %65 = vector.shape_cast %64 : vector<1x15x15xf32> to vector<15x15xf32>
    %66 = vector.broadcast %63 : f32 to vector<15x15xf32>
    %67 = arith.mulf %66, %65 : vector<15x15xf32>
    %68 = arith.addf %61, %67 : vector<15x15xf32>
    %69 = arith.truncf %68 : vector<15x15xf32> to vector<15x15xbf16>
    %70 = arith.extf %69 : vector<15x15xbf16> to vector<15x15xf32>
    %71 = arith.subf %68, %70 : vector<15x15xf32>
    %72 = arith.truncf %71 : vector<15x15xf32> to vector<15x15xbf16>
    %73 = arith.extf %72 : vector<15x15xbf16> to vector<15x15xf32>
    %74 = arith.subf %71, %73 : vector<15x15xf32>
    %75 = arith.truncf %74 : vector<15x15xf32> to vector<15x15xbf16>
    %cst_14 = arith.constant dense<0.000000e+00> : vector<15x8xf32>
    %76 = tpu.matmul %69, %11, %cst_14 {dimension_numbers = #tpu.dot_dimension_numbers<[1], [0], [0], [1], [0, 0, 1, 1], [], []>} : vector<15x15xbf16>, vector<15x8xbf16>, vector<15x8xf32> -> vector<15x8xf32>
    %cst_15 = arith.constant dense<0.000000e+00> : vector<15x8xf32>
    %77 = tpu.matmul %72, %11, %cst_15 {dimension_numbers = #tpu.dot_dimension_numbers<[1], [0], [0], [1], [0, 0, 1, 1], [], []>} : vector<15x15xbf16>, vector<15x8xbf16>, vector<15x8xf32> -> vector<15x8xf32>
    %78 = arith.addf %76, %77 : vector<15x8xf32>
    %cst_16 = arith.constant dense<0.000000e+00> : vector<15x8xf32>
    %79 = tpu.matmul %75, %11, %cst_16 {dimension_numbers = #tpu.dot_dimension_numbers<[1], [0], [0], [1], [0, 0, 1, 1], [], []>} : vector<15x15xbf16>, vector<15x8xbf16>, vector<15x8xf32> -> vector<15x8xf32>
    %80 = arith.addf %78, %79 : vector<15x8xf32>
    %81 = arith.truncf %80 : vector<15x8xf32> to vector<15x8xbf16>
    %82 = arith.extf %81 : vector<15x8xbf16> to vector<15x8xf32>
    %83 = arith.subf %80, %82 : vector<15x8xf32>
    %84 = arith.truncf %83 : vector<15x8xf32> to vector<15x8xbf16>
    %85 = arith.extf %84 : vector<15x8xbf16> to vector<15x8xf32>
    %86 = arith.subf %83, %85 : vector<15x8xf32>
    %87 = arith.truncf %86 : vector<15x8xf32> to vector<15x8xbf16>
    %cst_17 = arith.constant dense<0.000000e+00> : vector<8x8xf32>
    %88 = tpu.matmul %12, %81, %cst_17 {dimension_numbers = #tpu.dot_dimension_numbers<[1], [0], [0], [1], [0, 0, 1, 1], [], []>} : vector<8x15xbf16>, vector<15x8xbf16>, vector<8x8xf32> -> vector<8x8xf32>
    %cst_18 = arith.constant dense<0.000000e+00> : vector<8x8xf32>
    %89 = tpu.matmul %12, %84, %cst_18 {dimension_numbers = #tpu.dot_dimension_numbers<[1], [0], [0], [1], [0, 0, 1, 1], [], []>} : vector<8x15xbf16>, vector<15x8xbf16>, vector<8x8xf32> -> vector<8x8xf32>
    %90 = arith.addf %88, %89 : vector<8x8xf32>
    %cst_19 = arith.constant dense<0.000000e+00> : vector<8x8xf32>
    %91 = tpu.matmul %12, %87, %cst_19 {dimension_numbers = #tpu.dot_dimension_numbers<[1], [0], [0], [1], [0, 0, 1, 1], [], []>} : vector<8x15xbf16>, vector<15x8xbf16>, vector<8x8xf32> -> vector<8x8xf32>
    %92 = arith.addf %90, %91 : vector<8x8xf32>
    %c1 = arith.constant 1 : index
    %c0_20 = arith.constant 0 : index
    %c0_21 = arith.constant 0 : index
    %93 = vector.load %arg6[%c1, %c0_20, %c0_21] : memref<4x8x8xf32, #tpu.memory_space<vmem>>, vector<1x8x8xf32>
    %94 = vector.shape_cast %93 : vector<1x8x8xf32> to vector<8x8xf32>
    %95 = vector.shape_cast %92 : vector<8x8xf32> to vector<1x8x8xf32>
    tpu.vector_store %arg6[%c1, %c0_20, %c0_21], %95 {strides = array<i32>} : memref<4x8x8xf32, #tpu.memory_space<vmem>>, vector<1x8x8xf32>,
    %c2_i32 = arith.constant 2 : i32
    %96 = arith.addi %13, %c2_i32 : i32
    %97 = arith.index_cast %96 : i32 to index
    %98 = memref.load %arg1[%97] : memref<8xf32, #tpu.memory_space<smem>>
    %99 = vector.extract_strided_slice %8 {offsets = [2, 0, 0], sizes = [1, 15, 15], strides = [1, 1, 1]} : vector<4x15x15xf32> to vector<1x15x15xf32>
    %100 = vector.shape_cast %99 : vector<1x15x15xf32> to vector<15x15xf32>
    %101 = vector.broadcast %98 : f32 to vector<15x15xf32>
    %102 = arith.mulf %101, %100 : vector<15x15xf32>
    %103 = arith.index_cast %96 : i32 to index
    %104 = memref.load %arg2[%103] : memref<8xf32, #tpu.memory_space<smem>>
    %105 = vector.extract_strided_slice %10 {offsets = [2, 0, 0], sizes = [1, 15, 15], strides = [1, 1, 1]} : vector<4x15x15xf32> to vector<1x15x15xf32>
    %106 = vector.shape_cast %105 : vector<1x15x15xf32> to vector<15x15xf32>
    %107 = vector.broadcast %104 : f32 to vector<15x15xf32>
    %108 = arith.mulf %107, %106 : vector<15x15xf32>
    %109 = arith.addf %102, %108 : vector<15x15xf32>
    %110 = arith.truncf %109 : vector<15x15xf32> to vector<15x15xbf16>
    %111 = arith.extf %110 : vector<15x15xbf16> to vector<15x15xf32>
    %112 = arith.subf %109, %111 : vector<15x15xf32>
    %113 = arith.truncf %112 : vector<15x15xf32> to vector<15x15xbf16>
    %114 = arith.extf %113 : vector<15x15xbf16> to vector<15x15xf32>
    %115 = arith.subf %112, %114 : vector<15x15xf32>
    %116 = arith.truncf %115 : vector<15x15xf32> to vector<15x15xbf16>
    %cst_22 = arith.constant dense<0.000000e+00> : vector<15x8xf32>
    %117 = tpu.matmul %110, %11, %cst_22 {dimension_numbers = #tpu.dot_dimension_numbers<[1], [0], [0], [1], [0, 0, 1, 1], [], []>} : vector<15x15xbf16>, vector<15x8xbf16>, vector<15x8xf32> -> vector<15x8xf32>
    %cst_23 = arith.constant dense<0.000000e+00> : vector<15x8xf32>
    %118 = tpu.matmul %113, %11, %cst_23 {dimension_numbers = #tpu.dot_dimension_numbers<[1], [0], [0], [1], [0, 0, 1, 1], [], []>} : vector<15x15xbf16>, vector<15x8xbf16>, vector<15x8xf32> -> vector<15x8xf32>
    %119 = arith.addf %117, %118 : vector<15x8xf32>
    %cst_24 = arith.constant dense<0.000000e+00> : vector<15x8xf32>
    %120 = tpu.matmul %116, %11, %cst_24 {dimension_numbers = #tpu.dot_dimension_numbers<[1], [0], [0], [1], [0, 0, 1, 1], [], []>} : vector<15x15xbf16>, vector<15x8xbf16>, vector<15x8xf32> -> vector<15x8xf32>
    %121 = arith.addf %119, %120 : vector<15x8xf32>
    %122 = arith.truncf %121 : vector<15x8xf32> to vector<15x8xbf16>
    %123 = arith.extf %122 : vector<15x8xbf16> to vector<15x8xf32>
    %124 = arith.subf %121, %123 : vector<15x8xf32>
    %125 = arith.truncf %124 : vector<15x8xf32> to vector<15x8xbf16>
    %126 = arith.extf %125 : vector<15x8xbf16> to vector<15x8xf32>
    %127 = arith.subf %124, %126 : vector<15x8xf32>
    %128 = arith.truncf %127 : vector<15x8xf32> to vector<15x8xbf16>
    %cst_25 = arith.constant dense<0.000000e+00> : vector<8x8xf32>
    %129 = tpu.matmul %12, %122, %cst_25 {dimension_numbers = #tpu.dot_dimension_numbers<[1], [0], [0], [1], [0, 0, 1, 1], [], []>} : vector<8x15xbf16>, vector<15x8xbf16>, vector<8x8xf32> -> vector<8x8xf32>
    %cst_26 = arith.constant dense<0.000000e+00> : vector<8x8xf32>
    %130 = tpu.matmul %12, %125, %cst_26 {dimension_numbers = #tpu.dot_dimension_numbers<[1], [0], [0], [1], [0, 0, 1, 1], [], []>} : vector<8x15xbf16>, vector<15x8xbf16>, vector<8x8xf32> -> vector<8x8xf32>
    %131 = arith.addf %129, %130 : vector<8x8xf32>
    %cst_27 = arith.constant dense<0.000000e+00> : vector<8x8xf32>
    %132 = tpu.matmul %12, %128, %cst_27 {dimension_numbers = #tpu.dot_dimension_numbers<[1], [0], [0], [1], [0, 0, 1, 1], [], []>} : vector<8x15xbf16>, vector<15x8xbf16>, vector<8x8xf32> -> vector<8x8xf32>
    %133 = arith.addf %131, %132 : vector<8x8xf32>
    %c2 = arith.constant 2 : index
    %c0_28 = arith.constant 0 : index
    %c0_29 = arith.constant 0 : index
    %134 = vector.load %arg6[%c2, %c0_28, %c0_29] : memref<4x8x8xf32, #tpu.memory_space<vmem>>, vector<1x8x8xf32>
    %135 = vector.shape_cast %134 : vector<1x8x8xf32> to vector<8x8xf32>
    %136 = vector.shape_cast %133 : vector<8x8xf32> to vector<1x8x8xf32>
    tpu.vector_store %arg6[%c2, %c0_28, %c0_29], %136 {strides = array<i32>} : memref<4x8x8xf32, #tpu.memory_space<vmem>>, vector<1x8x8xf32>,
    %c3_i32 = arith.constant 3 : i32
    %137 = arith.addi %13, %c3_i32 : i32
    %138 = arith.index_cast %137 : i32 to index
    %139 = memref.load %arg1[%138] : memref<8xf32, #tpu.memory_space<smem>>
    %140 = vector.extract_strided_slice %8 {offsets = [3, 0, 0], sizes = [1, 15, 15], strides = [1, 1, 1]} : vector<4x15x15xf32> to vector<1x15x15xf32>
    %141 = vector.shape_cast %140 : vector<1x15x15xf32> to vector<15x15xf32>
    %142 = vector.broadcast %139 : f32 to vector<15x15xf32>
    %143 = arith.mulf %142, %141 : vector<15x15xf32>
    %144 = arith.index_cast %137 : i32 to index
    %145 = memref.load %arg2[%144] : memref<8xf32, #tpu.memory_space<smem>>
    %146 = vector.extract_strided_slice %10 {offsets = [3, 0, 0], sizes = [1, 15, 15], strides = [1, 1, 1]} : vector<4x15x15xf32> to vector<1x15x15xf32>
    %147 = vector.shape_cast %146 : vector<1x15x15xf32> to vector<15x15xf32>
    %148 = vector.broadcast %145 : f32 to vector<15x15xf32>
    %149 = arith.mulf %148, %147 : vector<15x15xf32>
    %150 = arith.addf %143, %149 : vector<15x15xf32>
    %151 = arith.truncf %150 : vector<15x15xf32> to vector<15x15xbf16>
    %152 = arith.extf %151 : vector<15x15xbf16> to vector<15x15xf32>
    %153 = arith.subf %150, %152 : vector<15x15xf32>
    %154 = arith.truncf %153 : vector<15x15xf32> to vector<15x15xbf16>
    %155 = arith.extf %154 : vector<15x15xbf16> to vector<15x15xf32>
    %156 = arith.subf %153, %155 : vector<15x15xf32>
    %157 = arith.truncf %156 : vector<15x15xf32> to vector<15x15xbf16>
    %cst_30 = arith.constant dense<0.000000e+00> : vector<15x8xf32>
    %158 = tpu.matmul %151, %11, %cst_30 {dimension_numbers = #tpu.dot_dimension_numbers<[1], [0], [0], [1], [0, 0, 1, 1], [], []>} : vector<15x15xbf16>, vector<15x8xbf16>, vector<15x8xf32> -> vector<15x8xf32>
    %cst_31 = arith.constant dense<0.000000e+00> : vector<15x8xf32>
    %159 = tpu.matmul %154, %11, %cst_31 {dimension_numbers = #tpu.dot_dimension_numbers<[1], [0], [0], [1], [0, 0, 1, 1], [], []>} : vector<15x15xbf16>, vector<15x8xbf16>, vector<15x8xf32> -> vector<15x8xf32>
    %160 = arith.addf %158, %159 : vector<15x8xf32>
    %cst_32 = arith.constant dense<0.000000e+00> : vector<15x8xf32>
    %161 = tpu.matmul %157, %11, %cst_32 {dimension_numbers = #tpu.dot_dimension_numbers<[1], [0], [0], [1], [0, 0, 1, 1], [], []>} : vector<15x15xbf16>, vector<15x8xbf16>, vector<15x8xf32> -> vector<15x8xf32>
    %162 = arith.addf %160, %161 : vector<15x8xf32>
    %163 = arith.truncf %162 : vector<15x8xf32> to vector<15x8xbf16>
    %164 = arith.extf %163 : vector<15x8xbf16> to vector<15x8xf32>
    %165 = arith.subf %162, %164 : vector<15x8xf32>
    %166 = arith.truncf %165 : vector<15x8xf32> to vector<15x8xbf16>
    %167 = arith.extf %166 : vector<15x8xbf16> to vector<15x8xf32>
    %168 = arith.subf %165, %167 : vector<15x8xf32>
    %169 = arith.truncf %168 : vector<15x8xf32> to vector<15x8xbf16>
    %cst_33 = arith.constant dense<0.000000e+00> : vector<8x8xf32>
    %170 = tpu.matmul %12, %163, %cst_33 {dimension_numbers = #tpu.dot_dimension_numbers<[1], [0], [0], [1], [0, 0, 1, 1], [], []>} : vector<8x15xbf16>, vector<15x8xbf16>, vector<8x8xf32> -> vector<8x8xf32>
    %cst_34 = arith.constant dense<0.000000e+00> : vector<8x8xf32>
    %171 = tpu.matmul %12, %166, %cst_34 {dimension_numbers = #tpu.dot_dimension_numbers<[1], [0], [0], [1], [0, 0, 1, 1], [], []>} : vector<8x15xbf16>, vector<15x8xbf16>, vector<8x8xf32> -> vector<8x8xf32>
    %172 = arith.addf %170, %171 : vector<8x8xf32>
    %cst_35 = arith.constant dense<0.000000e+00> : vector<8x8xf32>
    %173 = tpu.matmul %12, %169, %cst_35 {dimension_numbers = #tpu.dot_dimension_numbers<[1], [0], [0], [1], [0, 0, 1, 1], [], []>} : vector<8x15xbf16>, vector<15x8xbf16>, vector<8x8xf32> -> vector<8x8xf32>
    %174 = arith.addf %172, %173 : vector<8x8xf32>
    %c3 = arith.constant 3 : index
    %c0_36 = arith.constant 0 : index
    %c0_37 = arith.constant 0 : index
    %175 = vector.load %arg6[%c3, %c0_36, %c0_37] : memref<4x8x8xf32, #tpu.memory_space<vmem>>, vector<1x8x8xf32>
    %176 = vector.shape_cast %175 : vector<1x8x8xf32> to vector<8x8xf32>
    %177 = vector.shape_cast %174 : vector<8x8xf32> to vector<1x8x8xf32>
    tpu.vector_store %arg6[%c3, %c0_36, %c0_37], %177 {strides = array<i32>} : memref<4x8x8xf32, #tpu.memory_space<vmem>>, vector<1x8x8xf32>,
    return
  }
  func.func @transform_0(%arg0: i32) -> i32 {
    %c0_i32 = arith.constant 0 : i32
    %c0_i32_0 = arith.constant 0 : i32
    return %c0_i32 : i32
  }
  func.func @transform_1(%arg0: i32) -> i32 {
    %c0_i32 = arith.constant 0 : i32
    %c0_i32_0 = arith.constant 0 : i32
    return %c0_i32 : i32
  }
  func.func @transform_2(%arg0: i32) -> (i32, i32, i32) {
    %c0_i32 = arith.constant 0 : i32
    %c0_i32_0 = arith.constant 0 : i32
    %c0_i32_1 = arith.constant 0 : i32
    return %arg0, %c0_i32, %c0_i32_0 : i32, i32, i32
  }
  func.func @transform_3(%arg0: i32) -> (i32, i32) {
    %c0_i32 = arith.constant 0 : i32
    %c0_i32_0 = arith.constant 0 : i32
    %c0_i32_1 = arith.constant 0 : i32
    return %c0_i32, %c0_i32_0 : i32, i32
  }
  func.func @transform_4(%arg0: i32) -> (i32, i32) {
    %c0_i32 = arith.constant 0 : i32
    %c0_i32_0 = arith.constant 0 : i32
    %c0_i32_1 = arith.constant 0 : i32
    return %c0_i32, %c0_i32_0 : i32, i32
  }
  func.func @transform_5(%arg0: i32) -> (i32, i32, i32) {
    %c0_i32 = arith.constant 0 : i32
    %c0_i32_0 = arith.constant 0 : i32
    %c0_i32_1 = arith.constant 0 : i32
    return %arg0, %c0_i32, %c0_i32_0 : i32, i32, i32
  }
}

</mosaic_0001>

<bundles_post_ra>
// kernel: tpu_custom_call.1
= control target key start
LH: loop header
LB: loop body
LE: loop exit
PB: predicated region body
PF: predicated region fallthrough
CT: control target
= control target key end

     0   :  { %10 = vsyncpa [#allocation5], 0  ;;  %s2639_s0 = inlined_call_operand.vmem [shape: f32[8], index: 0, kind: input, shape index: {}]   ;;  %s2640_s1 = inlined_call_operand.vmem [shape: f32[8], index: 1, kind: input, shape index: {}]   ;;  %s2641_s2 = inlined_call_operand.hbm [shape: f32[8,16,16], index: 2, kind: input, shape index: {}]   ;;  %s2642_s3 = inlined_call_operand.vmem [shape: bf16[15,8], index: 3, kind: input, shape index: {}]   ;;  %s2643_s4 = inlined_call_operand.vmem [shape: bf16[8,15], index: 4, kind: input, shape index: {}]   ;;  %s2644_s5 = inlined_call_operand.hbm [shape: f32[8,8,8], index: 5, kind: output, shape index: {}]  }
   0x1   :  { %11 = vsyncpa [#allocation7], 0 }
   0x2   :  { %12 = vsyncpa [#allocation3], 0 }
   0x3   :  { %14 = vsyncpa [#allocation3 + $0x1], 0 }
   0x4   :  { %15 = vsyncpa [#allocation4], 0 }
   0x5   :  { %17 = vsyncpa [#allocation4 + $0x1], 0  ;;  %s2219_s18 = smov 0   ;;  %s2221_s19 = smov 0  }
   0x6   :  { %s2223_s20 = smov 0   ;;  %s2225_s21 = smov 0  }
   0x7 LB: > { %s2240_s22 = sadd.s32 4294967295, %s2175_s21   ;;  %s1726_s23 = sadd.s32 4294967294, %s2175_s21   ;;  %s2175_s21 = sphi %s2225_s21, %s2670_s21   ;;  %s2171_s20 = sphi %s2223_s20, %s2669_s20   ;;  %s2167_s19 = sphi %s2221_s19, %s2668_s19   ;;  %s2163_s18 = sphi %s2219_s18, %s2667_s18  }
   0x8   : > { %s2244_s24 = sadd.s32 1, %s2175_s21   ;;  %s72_s25 = sadd.s32 1, %s2171_s20 }
   0x9   : > { %s69_s26 = ssub.s32 %s2175_s21, %s2244_s24  ;;  %p79_p0 = scmp.ne.s32.totalorder %s2171_s20, %s2167_s19 }
   0xa   : > { %p70_p1 = scmp.eq.s32.totalorder %s69_s26, 0  ;;  %p80_p2 = scmp.eq.s32.totalorder %s2175_s21, 0 }
   0xb   : > { %p85_p3 = scmp.ne.s32.totalorder %s2167_s19, %s2163_s18  ;;  %p2645_p4 = scmp.eq.s32.totalorder %s2240_s22, 0 }
   0xc   : > { %s2256_s27 = scalar_select %p70_p1, %s2171_s20, %s72_s25  }
   0xd   : > { %p2258_p5 = por %p80_p2, %p79_p0  ;;  %p2264_p6 = por %p2645_p4, %p85_p3 }
   0xe   : > { %p151_p7 = scmp.eq.s32.totalorder %s2240_s22, 1  ;;  %p157_p8 = scmp.eq.s32.totalorder %s1726_s23, 1 }
   0xf   : > { %s2651_s29 = scalar_select %p2264_p6, 1, 0 }
  0x10   : > { %p1727_p9 = scmp.ge.s32.totalorder %s2175_s21, 1  ;;  %p164_p10 = scmp.lt.s32.totalorder %s2175_s21, 3 }
  0x11   : > { %p2271_p11 = por %p151_p7, %p79_p0  ;;  %p2275_p12 = por %p157_p8, %p85_p3 }
  0x12   : > { %p2279_p13 = pnand %p1727_p9, %p164_p10  ;;  %s177_s10 = sshll.u32 %s2639_s0, 4  ;;  %s178_s10 = int_to_ptr.vmem [resolvable:$true] %s177_s10 }
  0x13   : > { %s2652_s30 = scalar_select %p2271_p11, 1, 0 }
  0x14   : > { %s2653_s6 = scalar_select %p2275_p12, 1, 0 }
  0x15   : > { %s2654_s7 = scalar_select %p2279_p13, 1, 0 }
  0x16   : > { %p1981_p1 = pneg %p2279_p13  ;;  %p1998_p2 = scmp.lt.s32.totalorder %s2175_s21, 2 }
  0x17   : > { %s188_s14 = sshll.u32 %s2640_s1, 4  ;;  %s2045_s16 = scalar_lea.vmem %s178_s10, 16  ;;  %s189_s14 = int_to_ptr.vmem [resolvable:$true] %s188_s14 }
  0x18   : > { %p2292_p7 = pnand %p1981_p1, %p2645_p4  ;;  %p2301_p3 = pnand %p1998_p2, %p2258_p5 }
  0x19   : > { %p2046_p8 = scmp.ne.s32.totalorder %s178_s10, %s2045_s16  ;;  %p2053_p0 = scmp.lt.s32.totalorder %s178_s10, %s178_s10 }
  0x1a   : > { %s2656_s15 = scalar_select %p2301_p3, 1, 0 }
  0x1b   : > { %p2047_p9 = pneg %p2292_p7  ;;  %p2054_p4 = scmp.lt.s32.totalorder %s2045_s16, %s2045_s16 }
  0x1d   : > { %p2048_p10 = pnand %p2047_p9, %p2046_p8  ;;  %p2055_p12 = por %p2054_p4, %p2053_p0 }
  0x1f   : > { %p2049_p1 = pneg %p2048_p10 }
  0x21   : > { %p2056_p11 = pnand %p2055_p12, %p2049_p1 }
  0x23   : > { %2059 = shalt.err (!%p2056_p11)
}
  0x24   : > { %s2177_s17 = smov [#allocation2]   ;;  %s205_s23 = sand.u32 1, %s2171_s20  }
  0x25   : > { %1984 = dma.vmem_to_smem (!%p2292_p7), %s178_s10, 16, %s2177_s17, [#allocation5]  }
  0x26   : > { %s2060_s25 = scalar_lea.vmem %s189_s14, 16  ;;  %p2068_p8 = scmp.lt.s32.totalorder %s189_s14, %s189_s14 }
  0x27   : > { %p2061_p5 = scmp.ne.s32.totalorder %s189_s14, %s2060_s25  ;;  %p2069_p10 = scmp.lt.s32.totalorder %s2060_s25, %s2060_s25 }
  0x29   : > { %p2063_p2 = pnand %p2061_p5, %p2047_p9  ;;  %p2070_p13 = por %p2069_p10, %p2068_p8 }
  0x2b   : > { %p2064_p6 = pneg %p2063_p2 }
  0x2d   : > { %p2071_p3 = pnand %p2070_p13, %p2064_p6 }
  0x2f   : > { %2074 = shalt.err (!%p2071_p3)
}
  0x30   : > { %s2178_s26 = smov [#allocation6]   ;;  %s1731_s28 = sshll.u32 %s205_s23, 6 }
  0x31   : > { %1987 = dma.vmem_to_smem (!%p2292_p7), %s189_s14, 16, %s2178_s26, [#allocation7]  }
  0x32   : > { %s1775_s8 = sshll.u32 %s2175_s21, 10  ;;  %s209_s13 = scalar_lea.vmem [#allocation8], %s1731_s28 }
  0x33   : > { %s2322_s12 = scalar_lea.hbm %s2641_s2, %s1775_s8  ;;  %s217_s16 = sshll.u32 %s209_s13, 4  ;;  %s2324_s16 = int_to_ptr.vmem [resolvable:$true] %s217_s16 }
  0x34   : > { %s2326_s17 = scalar_lea.sflag [#allocation3], %s205_s23  ;;  %s2075_s11 = scalar_lea.hbm %s2322_s12, 1024 }
  0x35   : > { %p2076_p4 = scmp.ne.s32.totalorder %s2322_s12, %s2075_s11  ;;  %p2657_p6 = scmp.ne.s32.totalorder %s2656_s15, 0 }
  0x36   : > { %s2080_s26 = scalar_lea.hbm %s2641_s2, 2048  ;;  %p2081_p0 = scmp.lt.s32.totalorder %s2322_s12, %s2641_s2 }
  0x37   : > { %p2077_p11 = pneg %p2657_p6  ;;  %p2082_p7 = scmp.lt.s32.totalorder %s2080_s26, %s2075_s11 }
  0x39   : > { %p2078_p12 = pnand %p2077_p11, %p2076_p4  ;;  %p2083_p3 = por %p2082_p7, %p2081_p0 }
  0x3b   : > { %p2079_p13 = pneg %p2078_p12 }
  0x3d   : > { %p2084_p9 = pnand %p2083_p3, %p2079_p13 }
  0x3f   : > { %2087 = shalt.err (!%p2084_p9)
}
  0x40   : > { %s2088_s23 = scalar_lea.vmem %s2324_s16, 1024  ;;  %s2179_s28 = smov [#allocation8]  }
  0x41   : > { %p2089_p1 = scmp.ne.s32.totalorder %s2324_s16, %s2088_s23  ;;  %s2093_s10 = sshll.u32 %s2179_s28, 4  ;;  %s2094_s10 = int_to_ptr.vmem [resolvable:$false] %s2093_s10 }
  0x42   : > { %s2095_s13 = scalar_lea.vmem %s2094_s10, 2048  ;;  %p2096_p8 = scmp.lt.s32.totalorder %s2324_s16, %s2094_s10 }
  0x43   : > { %p2091_p5 = pnand %p2089_p1, %p2077_p11  ;;  %p2097_p10 = scmp.lt.s32.totalorder %s2095_s13, %s2088_s23 }
  0x45   : > { %p2092_p2 = pneg %p2091_p5  ;;  %p2098_p4 = por %p2097_p10, %p2096_p8 }
  0x47   : > { %p2099_p12 = pnand %p2098_p4, %p2092_p2 }
  0x49   : > { %2102 = shalt.err (!%p2099_p12)
}
  0x4a   : > { %s2180_s11 = smov 128   ;;  %s2181_s14 = smov 8  }
  0x4b   : > { %1991 = dma.hbm_to_vmem [thread:$0]  (!%p2657_p6), %s2322_s12, 1024, %s2324_s16, %s2326_s17, %s2180_s11, %s2180_s11, %s2181_s14  }
  0x4c   : > { %p2658_p11 = scmp.ne.s32.totalorder %s2654_s7, 0 }
  0x4d   : > { %p2659_p13 = scmp.eq.s32.totalorder (!%p2658_p11), %s2240_s22, 0 }
  0x4e   : > { %229 = sbr.rel (%p2658_p11) target bundleno = 1361 (0x551), region = 40 }
  0x53   : > { %2146 = dma.done.wait (%p2659_p13), [#allocation5], 16   ;;  %p2660_p0 = pmov %p2659_p13 }
  0x55   : > { %2148 = vsyncadd (%p2660_p0), [#allocation5], 4294967280  ;;  %p2661_p7 = pmov %p2660_p0 }
  0x56   : > { %p2662_p3 = pmov %p2660_p0 }
  0x57   : > { %2150 = dma.done.wait (%p2661_p7), [#allocation7], 16  }
  0x58   : > { %2152 = vsyncadd (%p2662_p3), [#allocation7], 4294967280  ;;  %s2358_s25 = sand.u32 1, %s2167_s19   ;;  %p2663_p6 = scmp.ne.s32.totalorder %s2651_s29, 0 }
  0x59   : > { %s1738_s7 = sshll.u32 %s2358_s25, 6  ;;  %s240_s15 = scalar_lea.sflag [#allocation3], %s2358_s25 }
  0x5a   : > { %s2362_s12 = scalar_lea.vmem [#allocation8], %s1738_s7 }
  0x5b   : > { %2154 = dma.done.wait (%p2663_p6), %s240_s15, 1024  }
  0x5c   : > { %2156 = vsyncadd (%p2663_p6), %s240_s15, 4294966272 }
  0x5d   : > { %248 = sfence }
  0x5e   : > { %v274_v0 = vld [vmem:[%s2362_s12] sm:$0xff]  ;;  %vm437_vm0 = vcmask 1047552   ;;  %s2182_s16 = smov 127   ;;  %vm338_vm1 = vcmask 1046528   ;;  %v275_v2 = vld [vmem:[%s2362_s12 + $0x8] sm:$0xff]  ;;  %v2183_v3 = vmov 65535  }
  0x5f   : > { %290 = vrot.lane.b32.xlu0 %v274_v0, %s2182_s16  ;;  %v2044_v1 = vld [vmem:[%s2642_s3] sm:$0xff]   ;;  %v438_v4 = vsel %vm338_vm1, 4294967295, %v2183_v3  ;;  %v2184_v5 = vmov 0.0   ;;  %vm2185_vm2 = vmmov 0   ;;  %v276_v8 = vld [vmem:[%s2362_s12 + $0x10] sm:$0xff]  ;;  %v277_v9 = vld [vmem:[%s2362_s12 + $0x18] sm:$0xff] }
  0x60   : > { %1831 = vmatprep.subr.bf16.mxu1 %v2184_v5  ;;  %1825 = vmatprep.subr.bf16.mxu0 %v2184_v5  ;;  %v2377_v6 = vsel %vm437_vm0, %v438_v4, 0  ;;  %s2396_s29 = sshll.u32 %s2240_s22, 2  ;;  %vm433_vm3 = vcmask 121856   ;;  %v2414_v45 = vld [vmem:[%s2362_s12 + $0x28] sm:$0xff]  ;;  %v2417_v46 = vld [vmem:[%s2362_s12 + $0x20] sm:$0xff]  ;;  %vm718_vm4 = vcmask 64512  }
  0x61   : > { %1833 = vmatprep.mubr.msk.bf16.mxu1 %vm2185_vm2, %v2184_v5  ;;  %1827 = vmatprep.mubr.msk.bf16.mxu0 %vm2185_vm2, %v2184_v5  ;;  %v2384_v7 = vand.u32 %v2044_v1, %v2377_v6  ;;  %s407_s8 = sld [smem:[#allocation2 + %s2396_s29]]  ;;  %s720_s23 = sadd.s32 1, %s2396_s29 }
  0x62   : > { %294 = vrot.lane.b32.xlu1 %v276_v8, %s2182_s16  ;;  %s411_s9 = sld [smem:[#allocation6 + %s2396_s29]]  ;;  %s1019_s14 = sadd.s32 2, %s2396_s29 }
  0x63   : > { %292 = vrot.lane.b32.xlu0 %v275_v2, %s2182_s16  ;;  %1832 = vmatpush3.bf16.msra.mxu1 %v2384_v7  ;;  %s721_s28 = sld [smem:[#allocation2 + %s720_s23]]  ;;  %s1318_s17 = sadd.s32 3, %s2396_s29 }
  0x64   : > { %1826 = vmatpush3.bf16.msra.mxu0 %v2384_v7  ;;  %1843 = vmatprep.subr.bf16.mxu1 %v2184_v5  ;;  %s725_s10 = sld [smem:[#allocation6 + %s720_s23]]  ;;  %s1618_s13 = scalar_lea.sflag [#allocation4], %s2358_s25 }
  0x65   : > { %1837 = vmatprep.subr.bf16.mxu0 %v2184_v5  ;;  %s2479_s7 = sld [smem:[#allocation2 + %s1019_s14]]  ;;  %p2664_p1 = scmp.ne.s32.totalorder %s2652_s30, 0 }
  0x66   : > { %296 = vrot.lane.b32.xlu1 %v277_v9, %s2182_s16  ;;  %s2481_s15 = sld [smem:[#allocation6 + %s1019_s14]]  ;;  %s2186_s11 = smov [#allocation9]  }
  0x67   : > { %v408_v20 = vstv %s407_s8  ;;  %298 = vrot.lane.b32.xlu0 %v2417_v46, %s2182_s16  ;;  %s2530_s26 = sld [smem:[#allocation2 + %s1318_s17]]  ;;  %s2107_s14 = sshll.u32 %s2186_s11, 4  ;;  %s2108_s14 = int_to_ptr.vmem [resolvable:$false] %s2107_s14 }
  0x68   : > { %v412_v21 = vstv %s411_s9  ;;  %s2532_s8 = sld [smem:[#allocation6 + %s1318_s17]]  ;;  %s1776_s9 = sshll.u32 %s2240_s22, 9 }
  0x69   : > { %v722_v4 = vstv %s721_s28 }
  0x6a   : > { %300 = vrot.lane.b32.xlu1 %v2414_v45, %s2182_s16 }
  0xd1   : > { %v291_v10 = vpop.permute.xlu0 %290 }
  0xd2   : > { %v314_v11 = vadd.f32 %v291_v10, %v274_v0  ;;  %v322_v12 = vmax.f32 %v274_v0, %v291_v10 }
  0xd4   : > { %v339_v16 = vrot.slane %v314_v11, 1  ;;  %v375_v17 = vrot.slane %v322_v12, 1  ;;  %v295_v47 = vpop.permute.xlu1 %294 }
  0xd5   : > { %v293_v13 = vpop.permute.xlu0 %292  ;;  %v316_v49 = vadd.f32 %v295_v47, %v276_v8  ;;  %v324_v50 = vmax.f32 %v276_v8, %v295_v47  ;;  %v726_v8 = vstv %s725_s10  ;;  %s2594_s10 = scalar_lea.hbm %s2644_s5, %s1776_s9 }
  0xd6   : > { %v315_v14 = vadd.f32 %v293_v13, %v275_v2  ;;  %v323_v15 = vmax.f32 %v275_v2, %v293_v13 }
  0xd7   : > { %v342_v53 = vrot.slane %v316_v49, 1  ;;  %v378_v54 = vrot.slane %v324_v50, 1 }
  0xd8   : > { %v340_v18 = vrot.slane %v315_v14, 1  ;;  %v376_v19 = vrot.slane %v323_v15, 1  ;;  %v297_v48 = vpop.permute.xlu1 %296 }
  0xd9   : > { %v317_v51 = vadd.f32 %v297_v48, %v277_v9  ;;  %v325_v52 = vmax.f32 %v277_v9, %v297_v48 }
  0xda   : > { %v341_v22 = vsel %vm338_vm1, %v339_v16, %v340_v18  ;;  %v360_v23 = vadd.f32 %v340_v18, %v315_v14  ;;  %v377_v24 = vsel %vm338_vm1, %v375_v17, %v376_v19  ;;  %v396_v25 = vmax.f32 %v323_v15, %v376_v19 }
  0xdb   : > { %v359_v26 = vadd.f32 %v341_v22, %v314_v11  ;;  %v395_v27 = vmax.f32 %v322_v12, %v377_v24  ;;  %v343_v55 = vrot.slane %v317_v51, 1  ;;  %v379_v56 = vrot.slane %v325_v52, 1 }
  0xdc   : > { %v410_v28 = vmul.f32 %v408_v20, %v360_v23  ;;  %v414_v29 = vmul.f32 %v412_v21, %v396_v25 }
  0xdd   : > { %v409_v30 = vmul.f32 %v408_v20, %v359_v26  ;;  %v413_v31 = vmul.f32 %v412_v21, %v395_v27  ;;  %v344_v59 = vsel %vm338_vm1, %v342_v53, %v343_v55  ;;  %v380_v60 = vsel %vm338_vm1, %v378_v54, %v379_v56  ;;  %v2465_v54 = vld [vmem:[%s2362_s12 + $0x38] sm:$0xff] }
  0xde   : > { %v416_v32 = vadd.f32 %v414_v29, %v410_v28  ;;  %v361_v0 = vadd.f32 %v344_v59, %v316_v49  ;;  %v362_v1 = vadd.f32 %v343_v55, %v317_v51  ;;  %v397_v2 = vmax.f32 %v324_v50, %v380_v60  ;;  %v2468_v55 = vld [vmem:[%s2362_s12 + $0x30] sm:$0xff]  ;;  %304 = vrot.lane.b32.xlu1 %v2465_v54, %s2182_s16  ;;  %v299_v59 = vpop.permute.xlu0 %298  ;;  %s1739_s12 = sshll.u32 %s2358_s25, 5 }
  0xdf   : > { %v415_v33 = vadd.f32 %v413_v31, %v409_v30  ;;  %v398_v3 = vmax.f32 %v325_v52, %v379_v56  ;;  %302 = vrot.lane.b32.xlu0 %v2468_v55, %s2182_s16  ;;  %s2486_s16 = scalar_lea.vmem [#allocation9], %s1739_s12 }
  0xe0   : > { %v723_v10 = vmul.f32 %v722_v4, %v361_v0  ;;  %v724_v11 = vmul.f32 %v722_v4, %v362_v1  ;;  %v727_v12 = vmul.f32 %v726_v8, %v397_v2  ;;  %v326_v0 = vmax.f32 %v2417_v46, %v299_v59  ;;  %s1631_s29 = sshll.u32 %s2486_s16, 4  ;;  %s2589_s29 = int_to_ptr.vmem [resolvable:$true] %s1631_s29 }
  0xe1   : > { %v417_v34 = vpack.c.bf16 %v416_v32, %v415_v33  ;;  %v728_v13 = vmul.f32 %v726_v8, %v398_v3  ;;  %s2103_s22 = scalar_lea.vmem %s2589_s29, 512  ;;  %p2110_p8 = scmp.lt.s32.totalorder %s2589_s29, %s2108_s14 }
  0xe2   : > { %v729_v16 = vadd.f32 %v727_v12, %v723_v10  ;;  %p2104_p9 = scmp.ne.s32.totalorder %s2589_s29, %s2103_s22 }
  0xe3   : > { %1834 = vmatmul.mubr.msk.bf16.vlgmr.msra.gmra.mxu1 %vm433_vm3, %v417_v34  ;;  %v418_v35 = vunpack.c.l.bf16 %v417_v34  ;;  %v419_v36 = vunpack.c.h.bf16 %v417_v34  ;;  %v730_v17 = vadd.f32 %v728_v13, %v724_v11  ;;  %v381_v11 = vrot.slane %v326_v0, 1 }
  0xe4   : > { %1845 = vmatprep.mubr.msk.bf16.mxu1 %vm2185_vm2, %v2184_v5  ;;  %p2105_p5 = pnand %p2104_p9, %p2664_p1 }
  0xe5   : > { %v420_v37 = vsub.f32 %v415_v33, %v418_v35  ;;  %v421_v38 = vsub.f32 %v416_v32, %v419_v36  ;;  %v731_v22 = vpack.c.bf16 %v730_v17, %v729_v16  ;;  %v2430_v35 = vld [vmem:[%s2643_s4] sm:$0xf] }
  0xe6   : > { %p2106_p2 = pneg %p2105_p5 }
  0xe7   : > { %v422_v39 = vpack.c.bf16 %v421_v38, %v420_v37  ;;  %v732_v28 = vunpack.c.l.bf16 %v731_v22  ;;  %v733_v29 = vunpack.c.h.bf16 %v731_v22 }
  0xe9   : > { %v423_v40 = vunpack.c.l.bf16 %v422_v39  ;;  %v424_v41 = vunpack.c.h.bf16 %v422_v39  ;;  %1828 = vmatmul.mubr.msk.bf16.vlgmr.msra.gmra.mxu0 %vm433_vm3, %v422_v39  ;;  %v734_v36 = vsub.f32 %v729_v16, %v732_v28 }
  0xea   : > { %1838 = vmatpush3.bf16.msra.mxu0 %v2384_v7  ;;  %1839 = vmatprep.mubr.msk.bf16.mxu0 %vm2185_vm2, %v2184_v5 }
  0xeb   : > { %v425_v42 = vsub.f32 %v420_v37, %v423_v40  ;;  %v426_v43 = vsub.f32 %v421_v38, %v424_v41  ;;  %1849 = vmatprep.subr.bf16.mxu0 %v2184_v5  ;;  %v735_v37 = vsub.f32 %v730_v17, %v733_v29 }
  0xed   : > { %v427_v44 = vpack.c.bf16 %v426_v43, %v425_v42  ;;  %v736_v42 = vpack.c.bf16 %v735_v37, %v734_v36 }
  0xef   : > { %v737_v48 = vunpack.c.l.bf16 %v736_v42  ;;  %v738_v49 = vunpack.c.h.bf16 %v736_v42 }
  0xf1   : > { %1840 = vmatmul.mubr.msk.bf16.vlgmr.msra.gmra.mxu0 %vm433_vm3, %v427_v44  ;;  %v739_v51 = vsub.f32 %v734_v36, %v737_v48  ;;  %v740_v52 = vsub.f32 %v735_v37, %v738_v49 }
  0xf2   : > { %1851 = vmatprep.mubr.msk.bf16.mxu0 %vm2185_vm2, %v2184_v5 }
  0xf3   : > { %v741_v53 = vpack.c.bf16 %v740_v52, %v739_v51 }
 0x1a3   : > { %v521_v57 = vpop.f32.mrf.mxu1 }
 0x1a5   : > { %v1835_v58 = vpop.f32.mrf.mxu1 }
 0x1a7   : > { %v524_v61 = vpop.f32.mrf.mxu1 }
 0x1a9   : > { %v477_v62 = vpop.f32.mrf.mxu0  ;;  %v1836_v63 = vpop.f32.mrf.mxu1 }
 0x1aa   : > { %v522_v20 = vadd.f32 %v521_v57, %v477_v62  ;;  %v301_v57 = vpop.permute.xlu1 %300  ;;  %v318_v63 = vadd.f32 %v299_v59, %v2417_v46 }
 0x1ab   : > { %v1829_v9 = vpop.f32.mrf.mxu0  ;;  %v327_v62 = vmax.f32 %v2414_v45, %v301_v57 }
 0x1ac   : > { %v345_v10 = vrot.slane %v318_v63, 1 }
 0x1ad   : > { %v480_v14 = vpop.f32.mrf.mxu0  ;;  %v382_v9 = vrot.slane %v327_v62, 1 }
 0x1ae   : > { %v525_v21 = vadd.f32 %v524_v61, %v480_v14  ;;  %v319_v61 = vadd.f32 %v301_v57, %v2414_v45 }
 0x1af   : > { %v1830_v15 = vpop.f32.mrf.mxu0  ;;  %v383_v16 = vsel %vm338_vm1, %v381_v11, %v382_v9 }
 0x1b0   : > { %v346_v8 = vrot.slane %v319_v61, 1 }
 0x1b1   : > { %v565_v18 = vpop.f32.mrf.mxu0 }
 0x1b2   : > { %v572_v24 = vadd.f32 %v565_v18, %v522_v20  ;;  %v347_v46 = vsel %vm338_vm1, %v345_v10, %v346_v8 }
 0x1b3   : > { %v1841_v19 = vpop.f32.mrf.mxu0 }
 0x1b5   : > { %v568_v23 = vpop.f32.mrf.mxu0 }
 0x1b6   : > { %v573_v25 = vadd.f32 %v568_v23, %v525_v21  ;;  %v400_v23 = vmax.f32 %v327_v62, %v382_v9 }
 0x1b7   : > { %v1842_v26 = vpop.f32.mrf.mxu0 }
 0x1b8   : > { %v574_v27 = vpack.c.bf16 %v573_v25, %v572_v24  ;;  %v1021_v26 = vstv %s2479_s7  ;;  %s2109_s7 = scalar_lea.vmem %s2108_s14, 1024 }
 0x1b9   : > { %p2111_p10 = scmp.lt.s32.totalorder %s2109_s7, %s2103_s22 }
 0x1ba   : > { %v575_v30 = vunpack.c.l.bf16 %v574_v27  ;;  %v576_v31 = vunpack.c.h.bf16 %v574_v27  ;;  %v632_v32 = vand.u32 %v574_v27, %v2377_v6  ;;  %v1025_v27 = vstv %s2481_s15 }
 0x1bb   : > { %p2112_p4 = por %p2111_p10, %p2110_p8 }
 0x1bc   : > { %v577_v33 = vsub.f32 %v572_v24, %v575_v30  ;;  %v578_v34 = vsub.f32 %v573_v25, %v576_v31  ;;  %1850 = vmatpush3.bf16.msra.mxu0 %v632_v32  ;;  %v363_v24 = vadd.f32 %v347_v46, %v318_v63  ;;  %v399_v25 = vmax.f32 %v326_v0, %v383_v16  ;;  %v305_v46 = vpop.permute.xlu1 %304 }
 0x1bd   : > { %1861 = vmatprep.subr.bf16.mxu0 %v2184_v5  ;;  %p2113_p12 = pnand %p2112_p4, %p2106_p2 }
 0x1be   : > { %v579_v38 = vpack.c.bf16 %v578_v34, %v577_v33  ;;  %v1026_v36 = vmul.f32 %v1025_v27, %v399_v25 }
 0x1bf   : > { %1852 = vmatmul.mubr.msk.bf16.vlgmr.msra.gmra.mxu0 %vm433_vm3, %v2430_v35 }
 0x1c0   : > { %v580_v39 = vunpack.c.l.bf16 %v579_v38  ;;  %v581_v40 = vunpack.c.h.bf16 %v579_v38  ;;  %v589_v41 = vand.u32 %v579_v38, %v2377_v6  ;;  %1862 = vmatpush3.bf16.msra.mxu0 %v2384_v7  ;;  %1863 = vmatprep.mubr.msk.bf16.mxu0 %vm2185_vm2, %v2184_v5 }
 0x1c1   : > { %1873 = vmatprep.subr.bf16.mxu0 %v2184_v5 }
 0x1c2   : > { %v582_v43 = vsub.f32 %v577_v33, %v580_v39  ;;  %v583_v44 = vsub.f32 %v578_v34, %v581_v40  ;;  %1844 = vmatpush3.bf16.msra.mxu1 %v589_v41  ;;  %v1027_v33 = vmul.f32 %v1025_v27, %v400_v23  ;;  %v1022_v34 = vmul.f32 %v1021_v26, %v363_v24 }
 0x1c3   : > { %1855 = vmatprep.subr.bf16.mxu1 %v2184_v5 }
 0x1c4   : > { %v584_v47 = vpack.c.bf16 %v583_v44, %v582_v43  ;;  %v1028_v40 = vadd.f32 %v1026_v36, %v1022_v34 }
 0x1c5   : > { %1846 = vmatmul.mubr.msk.bf16.vlgmr.msra.gmra.mxu1 %vm433_vm3, %v2430_v35 }
 0x1c6   : > { %v675_v50 = vand.u32 %v584_v47, %v2377_v6  ;;  %1857 = vmatprep.mubr.msk.bf16.mxu1 %vm2185_vm2, %v2184_v5 }
 0x1c7   : > { %1864 = vmatmul.mubr.msk.bf16.vlgmr.msra.gmra.mxu0 %vm433_vm3, %v736_v42 }
 0x1c8   : > { %1856 = vmatpush3.bf16.msra.mxu1 %v675_v50  ;;  %1874 = vmatpush3.bf16.msra.mxu0 %v2384_v7 }
 0x1c9   : > { %1875 = vmatprep.mubr.msk.bf16.mxu0 %vm2185_vm2, %v2184_v5  ;;  %1867 = vmatprep.subr.bf16.mxu1 %v2184_v5 }
 0x1ca   : > { %1885 = vmatprep.subr.bf16.mxu0 %v2184_v5 }
 0x1cd   : > { %1858 = vmatmul.mubr.msk.bf16.vlgmr.msra.gmra.mxu1 %vm433_vm3, %v2430_v35 }
 0x1ce   : > { %1868 = vmatpush3.bf16.msra.mxu1 %v2384_v7  ;;  %1869 = vmatprep.mubr.msk.bf16.mxu1 %vm2185_vm2, %v2184_v5 }
 0x1cf   : > { %1876 = vmatmul.mubr.msk.bf16.vlgmr.msra.gmra.mxu0 %vm433_vm3, %v741_v53  ;;  %1879 = vmatprep.subr.bf16.mxu1 %v2184_v5 }
 0x1d0   : > { %1887 = vmatprep.mubr.msk.bf16.mxu0 %vm2185_vm2, %v2184_v5 }
 0x1d5   : > { %1870 = vmatmul.mubr.msk.bf16.vlgmr.msra.gmra.mxu1 %vm433_vm3, %v731_v22  ;;  %v364_v22 = vadd.f32 %v346_v8, %v319_v61 }
 0x1d6   : > { %1881 = vmatprep.mubr.msk.bf16.mxu1 %vm2185_vm2, %v2184_v5 }
 0x1d7   : > { %v1023_v32 = vmul.f32 %v1021_v26, %v364_v22 }
 0x1d9   : > { %v1029_v39 = vadd.f32 %v1027_v33, %v1023_v32 }
 0x1db   : > { %v1030_v47 = vpack.c.bf16 %v1029_v39, %v1028_v40 }
 0x1dd   : > { %v1031_v52 = vunpack.c.l.bf16 %v1030_v47  ;;  %v1032_v53 = vunpack.c.h.bf16 %v1030_v47 }
 0x1df   : > { %v1033_v61 = vsub.f32 %v1028_v40, %v1031_v52  ;;  %v1034_v62 = vsub.f32 %v1029_v39, %v1032_v53 }
 0x27f   : > { %v668_v56 = vpop.f32.mrf.mxu0 }
 0x281   : > { %v1853_v58 = vpop.f32.mrf.mxu0 }
 0x283   : > { %v671_v60 = vpop.f32.mrf.mxu0 }
 0x285   : > { %v625_v1 = vpop.f32.mrf.mxu1  ;;  %v1854_v2 = vpop.f32.mrf.mxu0 }
 0x286   : > { %v669_v15 = vadd.f32 %v668_v56, %v625_v1 }
 0x287   : > { %v1847_v3 = vpop.f32.mrf.mxu1  ;;  %v779_v4 = vpop.f32.mrf.mxu0 }
 0x288   : > { %v1035_v3 = vpack.c.bf16 %v1034_v62, %v1033_v61 }
 0x289   : > { %v628_v12 = vpop.f32.mrf.mxu1  ;;  %v1865_v13 = vpop.f32.mrf.mxu0 }
 0x28a   : > { %v1036_v10 = vunpack.c.l.bf16 %v1035_v3  ;;  %v1037_v11 = vunpack.c.h.bf16 %v1035_v3 }
 0x28b   : > { %v1848_v45 = vpop.f32.mrf.mxu1  ;;  %v782_v14 = vpop.f32.mrf.mxu0 }
 0x28c   : > { %v1038_v13 = vsub.f32 %v1033_v61, %v1036_v10  ;;  %v1039_v45 = vsub.f32 %v1034_v62, %v1037_v11 }
 0x28d   : > { %v711_v17 = vpop.f32.mrf.mxu1  ;;  %v1866_v18 = vpop.f32.mrf.mxu0 }
 0x28e   : > { %v717_v19 = vadd.f32 %v711_v17, %v669_v15  ;;  %v303_v17 = vpop.permute.xlu0 %302 }
 0x28f   : > { %v1859_v20 = vpop.f32.mrf.mxu1  ;;  %v867_v21 = vpop.f32.mrf.mxu0  ;;  %v328_v22 = vmax.f32 %v2468_v55, %v303_v17 }
 0x290   : > { %719 = vst.msk [vmem:[%s2486_s16] sm:$0xff] %vm718_vm4, %v717_v19  ;;  %v321_v19 = vadd.f32 %v305_v46, %v2465_v54  ;;  %v329_v20 = vmax.f32 %v2465_v54, %v305_v46 }
 0x291   : > { %v714_v28 = vpop.f32.mrf.mxu1  ;;  %v1877_v29 = vpop.f32.mrf.mxu0 }
 0x292   : > { %v349_v27 = vrot.slane %v321_v19, 1  ;;  %v385_v28 = vrot.slane %v329_v20, 1 }
 0x293   : > { %v1860_v30 = vpop.f32.mrf.mxu1  ;;  %v870_v31 = vpop.f32.mrf.mxu0 }
 0x294   : > { %v384_v30 = vrot.slane %v328_v22, 1 }
 0x295   : > { %v823_v37 = vpop.f32.mrf.mxu1  ;;  %v1878_v38 = vpop.f32.mrf.mxu0 }
 0x296   : > { %v824_v42 = vadd.f32 %v823_v37, %v779_v4  ;;  %v386_v36 = vsel %vm338_vm1, %v384_v30, %v385_v28 }
 0x297   : > { %v1871_v41 = vpop.f32.mrf.mxu1 }
 0x298   : > { %v874_v49 = vadd.f32 %v867_v21, %v824_v42  ;;  %v320_v21 = vadd.f32 %v303_v17, %v2468_v55  ;;  %v366_v42 = vadd.f32 %v349_v27, %v321_v19 }
 0x299   : > { %v826_v43 = vpop.f32.mrf.mxu1 }
 0x29a   : > { %v827_v44 = vadd.f32 %v826_v43, %v782_v14  ;;  %v1040_v14 = vpack.c.bf16 %v1039_v45, %v1038_v13  ;;  %v348_v29 = vrot.slane %v320_v21, 1  ;;  %v402_v43 = vmax.f32 %v329_v20, %v385_v28 }
 0x29b   : > { %v1872_v48 = vpop.f32.mrf.mxu1 }
 0x29c   : > { %v875_v50 = vadd.f32 %v870_v31, %v827_v44  ;;  %v350_v34 = vsel %vm338_vm1, %v348_v29, %v349_v27  ;;  %v1320_v48 = vstv %s2530_s26 }
 0x29d   : > { %v365_v44 = vadd.f32 %v350_v34, %v320_v21 }
 0x29e   : > { %v876_v51 = vpack.c.bf16 %v875_v50, %v874_v49 }
 0x2a0   : > { %v877_v56 = vunpack.c.l.bf16 %v876_v51  ;;  %v878_v57 = vunpack.c.h.bf16 %v876_v51  ;;  %v931_v58 = vand.u32 %v876_v51, %v2377_v6 }
 0x2a2   : > { %v879_v59 = vsub.f32 %v874_v49, %v877_v56  ;;  %v880_v60 = vsub.f32 %v875_v50, %v878_v57  ;;  %1886 = vmatpush3.bf16.msra.mxu0 %v931_v58  ;;  %v1324_v49 = vstv %s2532_s8  ;;  %v1322_v56 = vmul.f32 %v1320_v48, %v366_v42 }
 0x2a3   : > { %1897 = vmatprep.subr.bf16.mxu0 %v2184_v5  ;;  %v1326_v57 = vmul.f32 %v1324_v49, %v402_v43  ;;  %v1321_v58 = vmul.f32 %v1320_v48, %v365_v44 }
 0x2a4   : > { %v881_v63 = vpack.c.bf16 %v880_v60, %v879_v59 }
 0x2a5   : > { %1888 = vmatmul.mubr.msk.bf16.vlgmr.msra.gmra.mxu0 %vm433_vm3, %v2430_v35  ;;  %v1328_v62 = vadd.f32 %v1326_v57, %v1322_v56 }
 0x2a6   : > { %v882_v0 = vunpack.c.l.bf16 %v881_v63  ;;  %v883_v1 = vunpack.c.h.bf16 %v881_v63  ;;  %v888_v2 = vand.u32 %v881_v63, %v2377_v6  ;;  %1898 = vmatpush3.bf16.msra.mxu0 %v2384_v7  ;;  %1899 = vmatprep.mubr.msk.bf16.mxu0 %vm2185_vm2, %v2184_v5 }
 0x2a7   : > { %1909 = vmatprep.subr.bf16.mxu0 %v2184_v5 }
 0x2a8   : > { %v884_v4 = vsub.f32 %v879_v59, %v882_v0  ;;  %v885_v8 = vsub.f32 %v880_v60, %v883_v1  ;;  %1880 = vmatpush3.bf16.msra.mxu1 %v888_v2 }
 0x2a9   : > { %1891 = vmatprep.subr.bf16.mxu1 %v2184_v5 }
 0x2aa   : > { %v886_v9 = vpack.c.bf16 %v885_v8, %v884_v4 }
 0x2ab   : > { %1882 = vmatmul.mubr.msk.bf16.vlgmr.msra.gmra.mxu1 %vm433_vm3, %v2430_v35 }
 0x2ac   : > { %v974_v12 = vand.u32 %v886_v9, %v2377_v6  ;;  %1893 = vmatprep.mubr.msk.bf16.mxu1 %vm2185_vm2, %v2184_v5 }
 0x2ad   : > { %1900 = vmatmul.mubr.msk.bf16.vlgmr.msra.gmra.mxu0 %vm433_vm3, %v1035_v3 }
 0x2ae   : > { %1892 = vmatpush3.bf16.msra.mxu1 %v974_v12  ;;  %1910 = vmatpush3.bf16.msra.mxu0 %v2384_v7 }
 0x2af   : > { %1911 = vmatprep.mubr.msk.bf16.mxu0 %vm2185_vm2, %v2184_v5  ;;  %1903 = vmatprep.subr.bf16.mxu1 %v2184_v5 }
 0x2b0   : > { %1921 = vmatprep.subr.bf16.mxu0 %v2184_v5 }
 0x2b3   : > { %1894 = vmatmul.mubr.msk.bf16.vlgmr.msra.gmra.mxu1 %vm433_vm3, %v2430_v35 }
 0x2b4   : > { %1904 = vmatpush3.bf16.msra.mxu1 %v2384_v7  ;;  %1905 = vmatprep.mubr.msk.bf16.mxu1 %vm2185_vm2, %v2184_v5 }
 0x2b5   : > { %1912 = vmatmul.mubr.msk.bf16.vlgmr.msra.gmra.mxu0 %vm433_vm3, %v1040_v14  ;;  %1915 = vmatprep.subr.bf16.mxu1 %v2184_v5 }
 0x2b6   : > { %1923 = vmatprep.mubr.msk.bf16.mxu0 %vm2185_vm2, %v2184_v5 }
 0x2bb   : > { %1906 = vmatmul.mubr.msk.bf16.vlgmr.msra.gmra.mxu1 %vm433_vm3, %v1030_v47  ;;  %v401_v47 = vmax.f32 %v328_v22, %v386_v36 }
 0x2bc   : > { %1917 = vmatprep.mubr.msk.bf16.mxu1 %vm2185_vm2, %v2184_v5 }
 0x2bd   : > { %v1325_v59 = vmul.f32 %v1324_v49, %v401_v47 }
 0x2bf   : > { %v1327_v63 = vadd.f32 %v1325_v59, %v1321_v58 }
 0x2c1   : > { %v1329_v4 = vpack.c.bf16 %v1328_v62, %v1327_v63 }
 0x2c3   : > { %v1330_v12 = vunpack.c.l.bf16 %v1329_v4  ;;  %v1331_v13 = vunpack.c.h.bf16 %v1329_v4 }
 0x2c5   : > { %v1332_v17 = vsub.f32 %v1327_v63, %v1330_v12 }
 0x365   : > { %v967_v15 = vpop.f32.mrf.mxu0 }
 0x367   : > { %v1889_v16 = vpop.f32.mrf.mxu0 }
 0x369   : > { %v970_v18 = vpop.f32.mrf.mxu0 }
 0x36a   : > { %v1333_v18 = vsub.f32 %v1328_v62, %v1331_v13 }
 0x36b   : > { %v924_v23 = vpop.f32.mrf.mxu1  ;;  %v1890_v24 = vpop.f32.mrf.mxu0 }
 0x36c   : > { %v968_v55 = vadd.f32 %v967_v15, %v924_v23  ;;  %v1334_v23 = vpack.c.bf16 %v1333_v18, %v1332_v17 }
 0x36d   : > { %v1883_v25 = vpop.f32.mrf.mxu1  ;;  %v1078_v26 = vpop.f32.mrf.mxu0 }
 0x36e   : > { %v1335_v27 = vunpack.c.l.bf16 %v1334_v23  ;;  %v1336_v28 = vunpack.c.h.bf16 %v1334_v23 }
 0x36f   : > { %v927_v31 = vpop.f32.mrf.mxu1  ;;  %v1901_v32 = vpop.f32.mrf.mxu0 }
 0x370   : > { %v1337_v30 = vsub.f32 %v1332_v17, %v1335_v27  ;;  %v1338_v31 = vsub.f32 %v1333_v18, %v1336_v28 }
 0x371   : > { %v1884_v54 = vpop.f32.mrf.mxu1  ;;  %v1081_v33 = vpop.f32.mrf.mxu0 }
 0x372   : > { %v1339_v32 = vpack.c.bf16 %v1338_v31, %v1337_v30 }
 0x373   : > { %v1010_v37 = vpop.f32.mrf.mxu1  ;;  %v1902_v38 = vpop.f32.mrf.mxu0 }
 0x374   : > { %v1016_v39 = vadd.f32 %v1010_v37, %v968_v55 }
 0x375   : > { %v1895_v40 = vpop.f32.mrf.mxu1  ;;  %v1166_v41 = vpop.f32.mrf.mxu0 }
 0x376   : > { %1754 = vst.msk [vmem:[%s2486_s16 + $0x8] sm:$0xff] %vm718_vm4, %v1016_v39 }
 0x377   : > { %v1013_v50 = vpop.f32.mrf.mxu1  ;;  %v1913_v51 = vpop.f32.mrf.mxu0 }
 0x379   : > { %v1896_v52 = vpop.f32.mrf.mxu1  ;;  %v1169_v53 = vpop.f32.mrf.mxu0 }
 0x37b   : > { %v1122_v60 = vpop.f32.mrf.mxu1  ;;  %v1914_v61 = vpop.f32.mrf.mxu0 }
 0x37c   : > { %v1123_v1 = vadd.f32 %v1122_v60, %v1078_v26 }
 0x37d   : > { %v1907_v0 = vpop.f32.mrf.mxu1 }
 0x37e   : > { %v1173_v9 = vadd.f32 %v1166_v41, %v1123_v1 }
 0x37f   : > { %v1125_v2 = vpop.f32.mrf.mxu1 }
 0x380   : > { %v1126_v3 = vadd.f32 %v1125_v2, %v1081_v33 }
 0x381   : > { %v1908_v8 = vpop.f32.mrf.mxu1 }
 0x382   : > { %v1174_v10 = vadd.f32 %v1169_v53, %v1126_v3 }
 0x384   : > { %v1175_v11 = vpack.c.bf16 %v1174_v10, %v1173_v9 }
 0x386   : > { %v1176_v45 = vunpack.c.l.bf16 %v1175_v11  ;;  %v1177_v14 = vunpack.c.h.bf16 %v1175_v11  ;;  %v1230_v15 = vand.u32 %v1175_v11, %v2377_v6 }
 0x388   : > { %v1178_v46 = vsub.f32 %v1173_v9, %v1176_v45  ;;  %v1179_v16 = vsub.f32 %v1174_v10, %v1177_v14  ;;  %1922 = vmatpush3.bf16.msra.mxu0 %v1230_v15 }
 0x389   : > { %1933 = vmatprep.subr.bf16.mxu0 %v2184_v5 }
 0x38a   : > { %v1180_v19 = vpack.c.bf16 %v1179_v16, %v1178_v46 }
 0x38b   : > { %1924 = vmatmul.mubr.msk.bf16.vlgmr.msra.gmra.mxu0 %vm433_vm3, %v2430_v35 }
 0x38c   : > { %v1181_v20 = vunpack.c.l.bf16 %v1180_v19  ;;  %v1182_v21 = vunpack.c.h.bf16 %v1180_v19  ;;  %v1187_v22 = vand.u32 %v1180_v19, %v2377_v6  ;;  %1934 = vmatpush3.bf16.msra.mxu0 %v2384_v7  ;;  %1935 = vmatprep.mubr.msk.bf16.mxu0 %vm2185_vm2, %v2184_v5 }
 0x38d   : > { %1945 = vmatprep.subr.bf16.mxu0 %v2184_v5 }
 0x38e   : > { %v1183_v24 = vsub.f32 %v1178_v46, %v1181_v20  ;;  %v1184_v25 = vsub.f32 %v1179_v16, %v1182_v21  ;;  %1916 = vmatpush3.bf16.msra.mxu1 %v1187_v22 }
 0x38f   : > { %1927 = vmatprep.subr.bf16.mxu1 %v2184_v5 }
 0x390   : > { %v1185_v26 = vpack.c.bf16 %v1184_v25, %v1183_v24 }
 0x391   : > { %1918 = vmatmul.mubr.msk.bf16.vlgmr.msra.gmra.mxu1 %vm433_vm3, %v2430_v35 }
 0x392   : > { %v1273_v29 = vand.u32 %v1185_v26, %v2377_v6  ;;  %1929 = vmatprep.mubr.msk.bf16.mxu1 %vm2185_vm2, %v2184_v5 }
 0x393   : > { %1936 = vmatmul.mubr.msk.bf16.vlgmr.msra.gmra.mxu0 %vm433_vm3, %v1334_v23 }
 0x394   : > { %1928 = vmatpush3.bf16.msra.mxu1 %v1273_v29  ;;  %1946 = vmatpush3.bf16.msra.mxu0 %v2384_v7 }
 0x395   : > { %1947 = vmatprep.mubr.msk.bf16.mxu0 %vm2185_vm2, %v2184_v5  ;;  %1939 = vmatprep.subr.bf16.mxu1 %v2184_v5 }
 0x396   : > { %1957 = vmatprep.subr.bf16.mxu0 %v2184_v5 }
 0x399   : > { %1930 = vmatmul.mubr.msk.bf16.vlgmr.msra.gmra.mxu1 %vm433_vm3, %v2430_v35 }
 0x39a   : > { %1940 = vmatpush3.bf16.msra.mxu1 %v2384_v7  ;;  %1941 = vmatprep.mubr.msk.bf16.mxu1 %vm2185_vm2, %v2184_v5 }
 0x39b   : > { %1948 = vmatmul.mubr.msk.bf16.vlgmr.msra.gmra.mxu0 %vm433_vm3, %v1339_v32  ;;  %1951 = vmatprep.subr.bf16.mxu1 %v2184_v5 }
 0x39c   : > { %1959 = vmatprep.mubr.msk.bf16.mxu0 %vm2185_vm2, %v2184_v5 }
 0x3a1   : > { %1942 = vmatmul.mubr.msk.bf16.vlgmr.msra.gmra.mxu1 %vm433_vm3, %v1329_v4 }
 0x3a2   : > { %1953 = vmatprep.mubr.msk.bf16.mxu1 %vm2185_vm2, %v2184_v5 }
 0x44b   : > { %v1266_v54 = vpop.f32.mrf.mxu0 }
 0x44d   : > { %v1925_v33 = vpop.f32.mrf.mxu0 }
 0x44f   : > { %v1269_v55 = vpop.f32.mrf.mxu0 }
 0x451   : > { %v1223_v7 = vpop.f32.mrf.mxu1  ;;  %v1926_v34 = vpop.f32.mrf.mxu0 }
 0x452   : > { %v1267_v42 = vadd.f32 %v1266_v54, %v1223_v7 }
 0x453   : > { %v1919_v36 = vpop.f32.mrf.mxu1  ;;  %v1377_v37 = vpop.f32.mrf.mxu0 }
 0x455   : > { %v1226_v38 = vpop.f32.mrf.mxu1  ;;  %v1937_v39 = vpop.f32.mrf.mxu0 }
 0x457   : > { %v1920_v40 = vpop.f32.mrf.mxu1  ;;  %v1380_v41 = vpop.f32.mrf.mxu0 }
 0x459   : > { %v1309_v43 = vpop.f32.mrf.mxu1  ;;  %v1938_v44 = vpop.f32.mrf.mxu0 }
 0x45a   : > { %v1315_v47 = vadd.f32 %v1309_v43, %v1267_v42 }
 0x45b   : > { %v1931_v48 = vpop.f32.mrf.mxu1  ;;  %v1465_v49 = vpop.f32.mrf.mxu0 }
 0x45c   : > { %1761 = vst.msk [vmem:[%s2486_s16 + $0x10] sm:$0xff] %vm718_vm4, %v1315_v47 }
 0x45d   : > { %v1312_v50 = vpop.f32.mrf.mxu1  ;;  %v1949_v51 = vpop.f32.mrf.mxu0 }
 0x45f   : > { %v1932_v52 = vpop.f32.mrf.mxu1  ;;  %v1468_v53 = vpop.f32.mrf.mxu0 }
 0x461   : > { %v1421_v56 = vpop.f32.mrf.mxu1  ;;  %v1950_v57 = vpop.f32.mrf.mxu0 }
 0x462   : > { %v1422_v59 = vadd.f32 %v1421_v56, %v1377_v37 }
 0x463   : > { %v1943_v58 = vpop.f32.mrf.mxu1 }
 0x464   : > { %v1472_v63 = vadd.f32 %v1465_v49, %v1422_v59 }
 0x465   : > { %v1424_v60 = vpop.f32.mrf.mxu1 }
 0x466   : > { %v1425_v61 = vadd.f32 %v1424_v60, %v1380_v41 }
 0x467   : > { %v1944_v62 = vpop.f32.mrf.mxu1 }
 0x468   : > { %v1473_v0 = vadd.f32 %v1468_v53, %v1425_v61 }
 0x46a   : > { %v1474_v1 = vpack.c.bf16 %v1473_v0, %v1472_v63 }
 0x46c   : > { %v1475_v2 = vunpack.c.l.bf16 %v1474_v1  ;;  %v1476_v3 = vunpack.c.h.bf16 %v1474_v1  ;;  %v1529_v4 = vand.u32 %v1474_v1, %v2377_v6 }
 0x46e   : > { %v1477_v8 = vsub.f32 %v1472_v63, %v1475_v2  ;;  %v1478_v9 = vsub.f32 %v1473_v0, %v1476_v3  ;;  %1958 = vmatpush3.bf16.msra.mxu0 %v1529_v4 }
 0x470   : > { %v1479_v10 = vpack.c.bf16 %v1478_v9, %v1477_v8 }
 0x471   : > { %1960 = vmatmul.mubr.msk.bf16.vlgmr.msra.gmra.mxu0 %vm433_vm3, %v2430_v35 }
 0x472   : > { %v1480_v11 = vunpack.c.l.bf16 %v1479_v10  ;;  %v1481_v12 = vunpack.c.h.bf16 %v1479_v10  ;;  %v1486_v13 = vand.u32 %v1479_v10, %v2377_v6 }
 0x474   : > { %v1482_v45 = vsub.f32 %v1477_v8, %v1480_v11  ;;  %v1483_v14 = vsub.f32 %v1478_v9, %v1481_v12  ;;  %1952 = vmatpush3.bf16.msra.mxu1 %v1486_v13 }
 0x475   : > { %1963 = vmatprep.subr.bf16.mxu1 %v2184_v5 }
 0x476   : > { %v1484_v15 = vpack.c.bf16 %v1483_v14, %v1482_v45 }
 0x477   : > { %1954 = vmatmul.mubr.msk.bf16.vlgmr.msra.gmra.mxu1 %vm433_vm3, %v2430_v35 }
 0x478   : > { %v1572_v46 = vand.u32 %v1484_v15, %v2377_v6  ;;  %1965 = vmatprep.mubr.msk.bf16.mxu1 %vm2185_vm2, %v2184_v5 }
 0x47a   : > { %1964 = vmatpush3.bf16.msra.mxu1 %v1572_v46 }
 0x47f   : > { %1966 = vmatmul.mubr.msk.bf16.vlgmr.msra.gmra.mxu1 %vm433_vm3, %v2430_v35 }
 0x531   : > { %v1565_v16 = vpop.f32.mrf.mxu0 }
 0x533   : > { %v1961_v17 = vpop.f32.mrf.mxu0 }
 0x535   : > { %v1568_v18 = vpop.f32.mrf.mxu0 }
 0x537   : > { %v1522_v19 = vpop.f32.mrf.mxu1  ;;  %v1962_v20 = vpop.f32.mrf.mxu0 }
 0x538   : > { %v1566_v5 = vadd.f32 %v1565_v16, %v1522_v19 }
 0x539   : > { %v1955_v21 = vpop.f32.mrf.mxu1 }
 0x53b   : > { %v1525_v22 = vpop.f32.mrf.mxu1 }
 0x53d   : > { %v1956_v6 = vpop.f32.mrf.mxu1 }
 0x53f   : > { %v1608_v35 = vpop.f32.mrf.mxu1 }
 0x540   : > { %v1614_v23 = vadd.f32 %v1608_v35, %v1566_v5 }
 0x541   : > { %v1967_v24 = vpop.f32.mrf.mxu1 }
 0x542   : > { %1768 = vst.msk [vmem:[%s2486_s16 + $0x18] sm:$0xff] %vm718_vm4, %v1614_v23 }
 0x543   : > { %v1611_v25 = vpop.f32.mrf.mxu1 }
 0x544   : > { %2116 = shalt.err (!%p2113_p12)
}
 0x545   : > { %s2117_s15 = scalar_lea.hbm %s2594_s10, 512  ;;  %s2121_s17 = scalar_lea.hbm %s2644_s5, 1024 }
 0x546   : > { %p2118_p11 = scmp.ne.s32.totalorder %s2594_s10, %s2117_s15  ;;  %p2122_p7 = scmp.lt.s32.totalorder %s2594_s10, %s2644_s5 }
 0x547   : > { %p2123_p3 = scmp.lt.s32.totalorder %s2121_s17, %s2117_s15 }
 0x548   : > { %p2119_p13 = pnand %p2118_p11, %p2664_p1 }
 0x549   : > { %p2124_p6 = por %p2123_p3, %p2122_p7 }
 0x54a   : > { %p2120_p0 = pneg %p2119_p13 }
 0x54c   : > { %p2125_p9 = pnand %p2124_p6, %p2120_p0 }
 0x54e   : > { %2128 = shalt.err (!%p2125_p9)
}
 0x54f   : > { %s2187_s9 = smov 128   ;;  %s2188_s23 = smov 8   ;;  %v1968_v26 = vpop.f32.mrf.mxu1 }
 0x550   : > { %1979 = dma.vmem_to_hbm [thread:$0]  (%p2664_p1), %s2589_s29, 512, %s2594_s10, %s1618_s13, %s2187_s9, %s2187_s9, %s2188_s23  }
 0x551 PF: > { %s1646_s28 = sand.u32 1, %s2163_s18   ;;  %p2665_p5 = scmp.ne.s32.totalorder %s2653_s6, 0 }
 0x552   : > { %p2666_p2 = scmp.ge.s32.totalorder %s2175_s21, 2  ;;  %s1647_s22 = scalar_lea.sflag [#allocation4], %s1646_s28 }
 0x554   : > { %p1993_p8 = pnand %p2666_p2, %p2665_p5 }
 0x556   : > { %p1994_p10 = pneg %p1993_p8 }
 0x558   : > { %2158 = dma.done.wait (%p1994_p10), %s1647_s22, 512  }
 0x559   : > { %2160 = vsyncadd (%p1994_p10), %s1647_s22, 4294966784  ;;  %p20_p4 = scmp.ge.s32.totalorder %s2244_s24, 4   ;;  %s2667_s18 = smov %s2167_s19 }
 0x55a   : > { %s2668_s19 = smov %s2171_s20  ;;  %s2669_s20 = smov %s2256_s27 }
 0x55b   : > { %s2670_s21 = smov %s2244_s24  ;;  %22 = sbr.rel (!%p20_p4) target bundleno = 7 (0x7), region = 97 }
 0x560   :  { %1652 = vsyncpa [#allocation3], 1 }
 0x561   :  { %1654 = vsyncpa [#allocation3 + $0x1], 1 }
 0x562   :  { %1655 = vsyncpa [#allocation4], 1 }
 0x563   :  { %1657 = vsyncpa [#allocation4 + $0x1], 1 }
 0x564   :  { %1658 = vsyncpa [#allocation5], 1 }
 0x565   :  { %1660 = vsyncpa [#allocation5 + $0x1], 1 }
 0x566   :  { %1661 = vsyncpa [#allocation7], 1 }

</bundles_post_ra>
